<compile_context>
chip_gen: v5e
topology: v5e:2x2
jax: 0.10.0
libtpu: 0.0.40
codegen_flags: <defaults>
</compile_context>

<pallas_src>
import jax
import jax.numpy as jnp
from jax.experimental import pallas as pl
from jax.experimental.pallas import tpu as pltpu

_LANE = 128


def _split_lane_kernel(x_ref, even_ref, odd_ref):
    # x_ref tile: (1, tile_t, 2*D).  De-interleave is a pair of contiguous
    # lane slices (vreg views); both output stores are lane-dense.
    d = even_ref.shape[-1]
    x = x_ref[...]
    even_ref[...] = x[:, :, :d]
    odd_ref[...] = x[:, :, d:]


def _split_copy_kernel(even_in_ref, odd_in_ref, even_ref, odd_ref):
    # Fallback path: the even/odd selection already happened in the DMA
    # (index_map over the squeezed size-2 axis), so this is a pure copy.
    even_ref[...] = even_in_ref[...]
    odd_ref[...] = odd_in_ref[...]


def _sublane_multiple(itemsize):
    # f32 -> 8, bf16/f16 -> 16, int8/fp8 -> 32 (packed sublane rows).
    return 8 * max(1, 4 // itemsize)


def _choose_tile_t(half_t, d, itemsize):
    """Largest time tile whose double-buffered footprint stays ~20 MiB."""
    sub = _sublane_multiple(itemsize)
    # Per time-row: input 2*D + outputs (D + D) = 4*D elements, x2 buffers.
    bytes_per_row = 8 * d * itemsize
    budget = 20 * 1024 * 1024
    tile_t = max(sub, budget // max(1, bytes_per_row))
    tile_t = min(tile_t, 2048)  # diminishing returns past ~1-2k rows
    if tile_t >= half_t:
        return half_t
    return max(sub, (tile_t // sub) * sub)


def splitting(x, *, tile_t=None):
    """Pallas implementation of Splitting.forward: returns (even, odd)."""
    B, T, D = x.shape
    # TODO(synk): odd sequence lengths would need a tail-row fixup outside the
    # kernel; SCINet always feeds even lengths into Splitting.
    assert T % 2 == 0, "sequence length must be even for the even/odd split"
    Th = T // 2
    itemsize = jnp.dtype(x.dtype).itemsize
    if tile_t is None:
        tile_t = _choose_tile_t(Th, D, itemsize)

    grid = (B, pl.cdiv(Th, tile_t))
    out_shape = (
        jax.ShapeDtypeStruct((B, Th, D), x.dtype),
        jax.ShapeDtypeStruct((B, Th, D), x.dtype),
    )
    out_specs = (
        pl.BlockSpec((1, tile_t, D), lambda b, t: (b, t, 0)),
        pl.BlockSpec((1, tile_t, D), lambda b, t: (b, t, 0)),
    )
    cost = pl.CostEstimate(
        flops=0,
        transcendentals=0,
        bytes_accessed=2 * B * T * D * itemsize,  # one read + one write
    )
    params = pltpu.CompilerParams(
        dimension_semantics=("parallel", "parallel"),
        vmem_limit_bytes=32 * 1024 * 1024,
    )

    if D % _LANE == 0:
        # Free, contiguous reshape: time-pair (2i, 2i+1) -> one 2*D-wide row.
        x_r = x.reshape(B, Th, 2 * D)
        return pl.pallas_call(
            _split_lane_kernel,
            out_shape=out_shape,
            grid=grid,
            in_specs=[pl.BlockSpec((1, tile_t, 2 * D), lambda b, t: (b, t, 0))],
            out_specs=out_specs,
            compiler_params=params,
            cost_estimate=cost,
        )(x_r)

    # Fallback: DMA-strided de-interleave via the squeezed size-2 axis.
    # Stores with last dim < 128 are masked (perf note), but correct.
    x_r = x.reshape(B, Th, 2, D)
    return pl.pallas_call(
        _split_copy_kernel,
        out_shape=out_shape,
        grid=grid,
        in_specs=[
            pl.BlockSpec((1, tile_t, None, D), lambda b, t: (b, t, 0, 0)),
            pl.BlockSpec((1, tile_t, None, D), lambda b, t: (b, t, 1, 0)),
        ],
        out_specs=out_specs,
        compiler_params=params,
        cost_estimate=cost,
    )(x_r, x_r)


if __name__ == "__main__":
    key = jax.random.PRNGKey(0)

    # Small shape matching the module's (batch, seq, feature) convention.
    B, T, D = 2, 16, 128
    x = jax.random.normal(key, (B, T, D), dtype=jnp.float32)
    even, odd = splitting(x)
    jax.block_until_ready((even, odd))
    assert even.shape == (B, T // 2, D) and odd.shape == (B, T // 2, D)
    assert jnp.array_equal(even, x[:, ::2, :])
    assert jnp.array_equal(odd, x[:, 1::2, :])

    # Multi-tile time axis (Th=512, tile_t=128), bf16, lane-aligned D.
    B2, T2, D2 = 2, 1024, 256
    x2 = jax.random.normal(jax.random.PRNGKey(1), (B2, T2, D2), dtype=jnp.bfloat16)
    even2, odd2 = splitting(x2, tile_t=128)
    jax.block_until_ready((even2, odd2))
    assert jnp.array_equal(even2, x2[:, ::2, :])
    assert jnp.array_equal(odd2, x2[:, 1::2, :])

    # Fallback path: D not a multiple of 128.
    B3, T3, D3 = 2, 8, 96
    x3 = jax.random.normal(jax.random.PRNGKey(2), (B3, T3, D3), dtype=jnp.float32)
    even3, odd3 = splitting(x3)
    jax.block_until_ready((even3, odd3))
    assert jnp.array_equal(even3, x3[:, ::2, :])
    assert jnp.array_equal(odd3, x3[:, 1::2, :])

    print("KERNEL_OK")
</pallas_src>

<mosaic_0001>
module attributes {stable_mosaic.version = 11 : i64} {
  func.func @_split_lane_kernel(%arg0: i32, %arg1: i32, %arg2: memref<1x8x256xf32, #tpu.memory_space<vmem>>, %arg3: memref<1x8x128xf32, #tpu.memory_space<vmem>>, %arg4: memref<1x8x128xf32, #tpu.memory_space<vmem>>) attributes {dimension_semantics = [#tpu.dimension_semantics<parallel>, #tpu.dimension_semantics<parallel>], iteration_bounds = array<i64: 2, 1>, scalar_prefetch = 0 : i64, scratch_operands = 0 : i64, tpu.core_type = #tpu.core_type<tc>, window_params = [{transform_indices = @transform_0, window_bounds = array<i64: 1, 8, 256>}, {transform_indices = @transform_1, window_bounds = array<i64: 1, 8, 128>}, {transform_indices = @transform_2, window_bounds = array<i64: 1, 8, 128>}]} {
    %c0 = arith.constant 0 : index
    %c0_0 = arith.constant 0 : index
    %c0_1 = arith.constant 0 : index
    %0 = vector.load %arg2[%c0, %c0_0, %c0_1] : memref<1x8x256xf32, #tpu.memory_space<vmem>>, vector<1x8x256xf32>
    %1 = vector.extract_strided_slice %0 {offsets = [0, 0, 0], sizes = [1, 8, 128], strides = [1, 1, 1]} : vector<1x8x256xf32> to vector<1x8x128xf32>
    %c0_2 = arith.constant 0 : index
    %c0_3 = arith.constant 0 : index
    %c0_4 = arith.constant 0 : index
    %2 = vector.load %arg3[%c0_2, %c0_3, %c0_4] : memref<1x8x128xf32, #tpu.memory_space<vmem>>, vector<1x8x128xf32>
    tpu.vector_store %arg3[%c0_2, %c0_3, %c0_4], %1 {strides = array<i32>} : memref<1x8x128xf32, #tpu.memory_space<vmem>>, vector<1x8x128xf32>,
    %3 = vector.extract_strided_slice %0 {offsets = [0, 0, 128], sizes = [1, 8, 128], strides = [1, 1, 1]} : vector<1x8x256xf32> to vector<1x8x128xf32>
    %c0_5 = arith.constant 0 : index
    %c0_6 = arith.constant 0 : index
    %c0_7 = arith.constant 0 : index
    %4 = vector.load %arg4[%c0_5, %c0_6, %c0_7] : memref<1x8x128xf32, #tpu.memory_space<vmem>>, vector<1x8x128xf32>
    tpu.vector_store %arg4[%c0_5, %c0_6, %c0_7], %3 {strides = array<i32>} : memref<1x8x128xf32, #tpu.memory_space<vmem>>, vector<1x8x128xf32>,
    return
  }
  func.func @transform_0(%arg0: i32, %arg1: i32) -> (i32, i32, i32) {
    %c0_i32 = arith.constant 0 : i32
    %c0_i32_0 = arith.constant 0 : i32
    return %arg0, %arg1, %c0_i32 : i32, i32, i32
  }
  func.func @transform_1(%arg0: i32, %arg1: i32) -> (i32, i32, i32) {
    %c0_i32 = arith.constant 0 : i32
    %c0_i32_0 = arith.constant 0 : i32
    return %arg0, %arg1, %c0_i32 : i32, i32, i32
  }
  func.func @transform_2(%arg0: i32, %arg1: i32) -> (i32, i32, i32) {
    %c0_i32 = arith.constant 0 : i32
    %c0_i32_0 = arith.constant 0 : i32
    return %arg0, %arg1, %c0_i32 : i32, i32, i32
  }
}

</mosaic_0001>

<bundles_post_ra>
// kernel: tpu_custom_call.1
= control target key start
LH: loop header
LB: loop body
LE: loop exit
PB: predicated region body
PF: predicated region fallthrough
CT: control target
= control target key end

     0   :  { %8 = vsyncpa [#allocation3], 0  ;;  %s738_s0 = inlined_call_operand.hbm [shape: f32[2,8,256], index: 0, kind: input, shape index: {}]   ;;  %s739_s1 = inlined_call_operand.hbm [shape: f32[2,8,128], index: 1, kind: output, shape index: {0}]   ;;  %s740_s2 = inlined_call_operand.hbm [shape: f32[2,8,128], index: 2, kind: output, shape index: {1}]  }
   0x1   :  { %10 = vsyncpa [#allocation3 + $0x1], 0 }
   0x2   :  { %11 = vsyncpa [#allocation4], 0 }
   0x3   :  { %13 = vsyncpa [#allocation4 + $0x1], 0 }
   0x4   :  { %14 = vsyncpa [#allocation7], 0 }
   0x5   :  { %16 = vsyncpa [#allocation7 + $0x1], 0  ;;  %s596_s9 = smov 0   ;;  %s598_s10 = smov 0  }
   0x6   :  { %s600_s11 = smov 0   ;;  %s602_s12 = smov 0  }
   0x7   :  { %s604_s13 = smov 0   ;;  %s606_s14 = smov 0  }
   0x8 LB: > { %s350_s15 = sadd.s32 4294967295, %s579_s14   ;;  %s351_s16 = sadd.s32 4294967294, %s579_s14   ;;  %s579_s14 = sphi %s606_s14, %s22_s14   ;;  %s575_s13 = sphi %s604_s13, %s749_s13   ;;  %s571_s12 = sphi %s602_s12, %s748_s12   ;;  %s567_s11 = sphi %s600_s11, %s747_s11   ;;  %s563_s10 = sphi %s598_s10, %s746_s10   ;;  %s559_s9 = sphi %s596_s9, %s745_s9  }
   0x9   : > { %s34_s17 = sadd.s32 1, %s575_s13  ;;  %s43_s18 = sadd.s32 1, %s567_s11 }
   0xa   : > { %p36_p0 = scmp.ge.s32.totalorder %s34_s17, 2  ;;  %p50_p1 = scmp.ne.s32.totalorder %s567_s11, %s563_s10 }
   0xb   : > { %p51_p2 = scmp.eq.s32.totalorder %s579_s14, 0  ;;  %p56_p3 = scmp.ne.s32.totalorder %s563_s10, %s559_s9 }
   0xc   : > { %s751_s17 = smov (%p36_p0, %s34_s17), 0  ;;  %p57_p5 = scmp.eq.s32.totalorder %s350_s15, 0 }
   0xd   : > { %p637_p4 = por %p51_p2, %p50_p1  ;;  %s38_s20 = ssub.s32 %s575_s13, %s751_s17 }
   0xe   : > { %p82_p6 = scmp.eq.s32.totalorder %s350_s15, 1  ;;  %p41_p7 = scmp.eq.s32.totalorder %s38_s20, 0 }
   0xf   : > { %p643_p8 = por %p57_p5, %p56_p3  ;;  %p88_p10 = scmp.eq.s32.totalorder %s351_s16, 1 }
  0x10   : > { %p647_p9 = por %p82_p6, %p50_p1  ;;  %p353_p12 = scmp.ge.s32.totalorder %s579_s14, 2 }
  0x11   : > { %s652_s23 = scalar_select %p41_p7, %s567_s11, %s43_s18  }
  0x12   : > { %p654_p11 = por %p88_p10, %p56_p3  ;;  %p385_p13 = scmp.lt.s32.totalorder %s579_s14, 2 }
  0x13   : > { %s136_s25 = sand.u32 1, %s567_s11   ;;  %s367_s27 = sshll.u32 %s575_s13, 4 }
  0x14   : > { %s354_s26 = sshll.u32 %s136_s25, 4  ;;  %s147_s30 = scalar_lea.hbm %s738_s0, %s367_s27 }
  0x15   : > { %s140_s3 = scalar_lea.vmem [#allocation2], %s354_s26  ;;  %s149_s5 = sshll.u32 %s147_s30, 4  ;;  %s150_s5 = int_to_ptr.hbm [resolvable:$true] %s149_s5 }
  0x16   : > { %s151_s4 = sshll.u32 %s140_s3, 4  ;;  %p375_p0 = pnand %p385_p13, %p637_p4  ;;  %s152_s4 = int_to_ptr.vmem [resolvable:$true] %s151_s4 }
  0x17   : > { %p357_p1 = scmp.ge.s32.totalorder %s579_s14, 1  ;;  %p156_p2 = scmp.lt.s32.totalorder %s579_s14, 3 }
  0x18   : > { %s137_s6 = scalar_lea.sflag [#allocation3], %s136_s25 }
  0x19   : > { %377 = dma.hbm_to_vmem [thread:$0]  (!%p375_p0), %s150_s5, 256, %s152_s4, %s137_s6  }
  0x1a   : > { %p157_p3 = pnand %p357_p1, %p156_p2 }
  0x1b   : > { %s670_s7 = sand.u32 (!%p157_p3), 1, %s563_s10  }
  0x1c   : > { %160 = sbr.rel (%p157_p3) target bundleno = 63 (0x3f), region = 24  ;;  %s358_s8 = sshll.u32 (!%p157_p3), %s670_s7, 4 }
  0x1d   : > { %s163_s15 = scalar_lea.sflag (!%p157_p3), [#allocation3], %s670_s7  ;;  %s166_s16 = scalar_lea.vmem (!%p157_p3), [#allocation2], %s358_s8 }
  0x21   : > { %546 = dma.done.wait (%p643_p8), %s163_s15, 256  }
  0x22   : > { %548 = vsyncadd (%p643_p8), %s163_s15, 4294967040  ;;  %s359_s18 = sshll.u32 %s670_s7, 3  ;;  %s363_s27 = sshll.u32 %s571_s12, 3  ;;  %v193_v0 = vld [vmem:[%s166_s16] sm:$0xff]  ;;  %v194_v1 = vld [vmem:[%s166_s16 + $0x8] sm:$0xff] }
  0x23   : > { %s185_s19 = scalar_lea.vmem [#allocation5], %s359_s18  ;;  %s192_s25 = scalar_lea.vmem [#allocation6], %s359_s18 }
  0x24   : > { %s216_s20 = sshll.u32 %s185_s19, 4  ;;  %s231_s26 = sshll.u32 %s192_s25, 4  ;;  %195 = vst [vmem:[%s185_s19] sm:$0xff] %v193_v0  ;;  %s217_s20 = int_to_ptr.vmem [resolvable:$true] %s216_s20  ;;  %s679_s26 = int_to_ptr.vmem [resolvable:$true] %s231_s26 }
  0x25   : > { %s214_s30 = scalar_lea.hbm %s739_s1, %s363_s27  ;;  %s229_s4 = scalar_lea.hbm %s740_s2, %s363_s27  ;;  %196 = vst [vmem:[%s192_s25] sm:$0xff] %v194_v1 }
  0x26   : > { %s218_s5 = sshll.u32 %s214_s30, 4  ;;  %s233_s6 = sshll.u32 %s229_s4, 4  ;;  %s219_s5 = int_to_ptr.hbm [resolvable:$true] %s218_s5  ;;  %s688_s6 = int_to_ptr.hbm [resolvable:$true] %s233_s6 }
  0x27   : > { %s198_s8 = scalar_lea.sflag [#allocation4], %s670_s7  ;;  %s479_s12 = sshra.s32 %s219_s5, 4  ;;  %s480_s12 = int_to_ptr.hbm [resolvable:$true] %s479_s12 }
  0x28   : > { %s481_s15 = scalar_lea.hbm %s480_s12, 8  ;;  %s485_s27 = scalar_lea.hbm %s739_s1, 16 }
  0x29   : > { %p482_p4 = scmp.ne.s32.totalorder %s480_s12, %s481_s15  ;;  %p486_p7 = scmp.lt.s32.totalorder %s480_s12, %s739_s1 }
  0x2a   : > { %p487_p8 = scmp.lt.s32.totalorder %s485_s27, %s481_s15 }
  0x2b   : > { %p483_p5 = pnand %p482_p4, %p647_p9 }
  0x2c   : > { %p488_p10 = por %p487_p8, %p486_p7 }
  0x2d   : > { %p484_p6 = pneg %p483_p5 }
  0x2f   : > { %p489_p13 = pnand %p488_p10, %p484_p6 }
  0x31   : > { %492 = shalt.err (!%p489_p13)
}
  0x32   : > { %370 = dma.vmem_to_hbm [thread:$0]  (%p647_p9), %s217_s20, 128, %s219_s5, %s198_s8  }
  0x33   : > { %s203_s16 = scalar_lea.sflag [#allocation7], %s670_s7  ;;  %s507_s19 = sshra.s32 %s688_s6, 4  ;;  %s508_s19 = int_to_ptr.hbm [resolvable:$true] %s507_s19 }
  0x34   : > { %s509_s25 = scalar_lea.hbm %s508_s19, 8  ;;  %s513_s4 = scalar_lea.hbm %s740_s2, 16 }
  0x35   : > { %p510_p0 = scmp.ne.s32.totalorder %s508_s19, %s509_s25  ;;  %p514_p3 = scmp.lt.s32.totalorder %s508_s19, %s740_s2 }
  0x36   : > { %p515_p4 = scmp.lt.s32.totalorder %s513_s4, %s509_s25 }
  0x37   : > { %p511_p1 = pnand %p510_p0, %p647_p9 }
  0x38   : > { %p516_p5 = por %p515_p4, %p514_p3 }
  0x39   : > { %p512_p2 = pneg %p511_p1 }
  0x3b   : > { %p517_p6 = pnand %p516_p5, %p512_p2 }
  0x3d   : > { %520 = shalt.err (!%p517_p6)
}
  0x3e   : > { %371 = dma.vmem_to_hbm [thread:$0]  (%p647_p9), %s679_s26, 128, %s688_s6, %s203_s16  }
  0x3f PF: > { %s245_s7 = sand.u32 1, %s559_s9   ;;  %p379_p7 = pnand %p353_p12, %p654_p11 }
  0x40   : > { %s246_s20 = scalar_lea.sflag [#allocation4], %s245_s7 }
  0x41   : > { %p380_p8 = pneg %p379_p7 }
  0x43   : > { %550 = dma.done.wait (%p380_p8), %s246_s20, 128  }
  0x44   : > { %552 = vsyncadd (%p380_p8), %s246_s20, 4294967168  ;;  %s256_s5 = scalar_lea.sflag [#allocation7], %s245_s7 }
  0x45   : > { %554 = dma.done.wait (%p380_p8), %s256_s5, 128  }
  0x46   : > { %556 = vsyncadd (%p380_p8), %s256_s5, 4294967168  ;;  %s22_s14 = sadd.s32 1, %s579_s14   ;;  %s745_s9 = smov %s563_s10 }
  0x47   : > { %p19_p10 = scmp.ge.s32.totalorder %s22_s14, 4   ;;  %s746_s10 = smov %s567_s11 }
  0x48   : > { %s747_s11 = smov %s652_s23  ;;  %s748_s12 = smov %s575_s13 }
  0x49   : > { %s749_s13 = smov %s751_s17  ;;  %21 = sbr.rel (!%p19_p10) target bundleno = 8 (0x8), region = 86 }
  0x4e   :  { %262 = vsyncpa [#allocation3], 1 }
  0x4f   :  { %264 = vsyncpa [#allocation3 + $0x1], 1 }
  0x50   :  { %265 = vsyncpa [#allocation4], 1 }
  0x51   :  { %267 = vsyncpa [#allocation4 + $0x1], 1 }
  0x52   :  { %268 = vsyncpa [#allocation7], 1 }
  0x53   :  { %270 = vsyncpa [#allocation7 + $0x1], 1 }

</bundles_post_ra>
